<compile_context>
chip_gen: v7x
topology: tpu7x:2x2x1
jax: 0.10.0
libtpu: 0.0.40
codegen_flags: <defaults>
</compile_context>

<pallas_src>
import numpy as np
import jax
import jax.numpy as jnp
from jax import lax
from jax.experimental import pallas as pl
from jax.experimental.pallas import tpu as pltpu


def _actor_kernel(prev_ref,    # VMEM (TB, 1)   int32  previous action index per row
                  state_ref,   # VMEM (TB, N, F) f32   node features
                  wt_ref,      # VMEM (F, F)    f32    act_query weight, pre-transposed
                  mask_ref,    # VMEM (TB, N)   f32    additive -inf / 0 candidate mask
                  probs_ref,   # VMEM (TB, N)   f32
                  logp_ref,    # VMEM (TB, N)   f32
                  ent_ref):    # VMEM (TB, 1)   f32
    tb, n, _ = state_ref.shape
    state = state_ref[...]                                      # (TB, N, F)

    # prev_node_feat = state_feat[b, prev_act[b], :] via one-hot select + reduce
    node_ids = lax.broadcasted_iota(jnp.int32, (tb, n), 1)      # (TB, N)
    sel = (node_ids == prev_ref[...]).astype(jnp.float32)       # (TB, N) one-hot
    prev_feat = jnp.sum(sel[:, :, None] * state, axis=1)        # (TB, F) sublane reduce

    # act_query = tanh(prev_feat @ W.T): one batched MXU matmul for all rows
    q = jnp.tanh(jnp.dot(prev_feat, wt_ref[...],
                         preferred_element_type=jnp.float32))   # (TB, F)

    # act_scores[b, n] = sum_f q[b, f] * state[b, n, f]  (VPU mul + lane reduce)
    scores = jnp.sum(q[:, None, :] * state, axis=-1) + mask_ref[...]   # (TB, N)

    # softmax over nodes (dim=1 in torch), log-probs, Categorical entropy
    m = jnp.max(scores, axis=-1, keepdims=True)
    e = jnp.exp(scores - m)
    s = jnp.sum(e, axis=-1, keepdims=True)
    probs = e * pl.reciprocal(s, approx=True)                   # EUP reciprocal
    logp = (scores - m) - jnp.log(s)

    # Categorical.entropy(): clamp logits to finfo.min so 0 * (-inf) -> 0
    min_real = float(jnp.finfo(jnp.float32).min)
    ent = -jnp.sum(jnp.maximum(logp, min_real) * probs, axis=-1, keepdims=True)

    probs_ref[...] = probs
    logp_ref[...] = logp
    ent_ref[...] = ent


def actor_pallas(input_feat, w, mask, prev_act, *, block_b=None):
    """Hot path of ActorNet._select_node.
    Returns (probs, log_probs, entropy) with shapes (B, N), (B, N), (B,)."""
    B, N, F = input_feat.shape
    if input_feat.dtype != jnp.float32:        # avoid a pointless HBM copy when already f32
        input_feat = input_feat.astype(jnp.float32)
    # TODO(synk): for bandwidth-bound large shapes, feed input_feat as bf16 and
    # upcast in-kernel to halve DMA bytes (kept f32 here to match the torch spec).
    wt = jnp.transpose(w).astype(jnp.float32)  # x @ wt == x @ W.T (nn.Linear, bias=False)
    mask = mask.astype(jnp.float32)
    prev = prev_act.astype(jnp.int32).reshape(B, 1)

    if block_b is None or block_b >= B:
        block_b = B                            # whole batch in a single grid step
    nb = pl.cdiv(B, block_b)

    grid_spec = pltpu.PrefetchScalarGridSpec(
        num_scalar_prefetch=0,
        grid=(nb,),
        in_specs=[
            pl.BlockSpec((block_b, 1), lambda i: (i, 0)),        # prev_act
            pl.BlockSpec((block_b, N, F), lambda i: (i, 0, 0)),  # state_feat
            pl.BlockSpec((F, F), lambda i: (0, 0)),              # W.T (constant)
            pl.BlockSpec((block_b, N), lambda i: (i, 0)),        # mask
        ],
        out_specs=[
            pl.BlockSpec((block_b, N), lambda i: (i, 0)),        # probs
            pl.BlockSpec((block_b, N), lambda i: (i, 0)),        # log_probs
            pl.BlockSpec((block_b, 1), lambda i: (i, 0)),        # entropy
        ],
    )

    probs, logp, ent = pl.pallas_call(
        _actor_kernel,
        grid_spec=grid_spec,
        out_shape=(
            jax.ShapeDtypeStruct((B, N), jnp.float32),
            jax.ShapeDtypeStruct((B, N), jnp.float32),
            jax.ShapeDtypeStruct((B, 1), jnp.float32),
        ),
        compiler_params=pltpu.CompilerParams(
            dimension_semantics=("parallel",)),
    )(prev, input_feat, wt, mask)

    return probs, logp, ent[:, 0]


def build_mask(batch_size, num_nodes, node_candidates):
    # Glue equivalent of ActorNet._get_mask (python-list driven, stays outside kernel).
    masks = np.full((batch_size, num_nodes), -np.inf, dtype=np.float32)
    for b in range(batch_size):
        for node in node_candidates[b]:
            masks[b, node] = 0.0
    return jnp.asarray(masks)


def actor_net_forward(params, input_feat, node_candidates, prev_act,
                      known_action=None, sample_key=None):
    """Semantics of ActorNet.forward: returns (act, log_prob, entropy)."""
    B, N, _ = input_feat.shape
    mask = build_mask(B, N, node_candidates)
    probs, logp, entropy = actor_pallas(input_feat, params["act_query_w"], mask,
                                        prev_act)
    if known_action is None:
        # TODO(synk): torch Categorical.sample uses torch RNG; here we use jax.random.
        act = jax.random.categorical(sample_key, logp, axis=-1)
    else:
        act = known_action
    log_prob = jnp.take_along_axis(logp, act[:, None].astype(jnp.int32), axis=1)[:, 0]
    return act, log_prob, entropy


def actor_reference(input_feat, w, mask, prev_act):
    """Pure-JAX reference mirroring the torch module, for a numerical check."""
    B = input_feat.shape[0]
    prev_feat = input_feat[jnp.arange(B), prev_act, :]
    q = jnp.tanh(prev_feat @ w.T)
    scores = jnp.sum(q[:, None, :] * input_feat, axis=-1) + mask
    logp = jax.nn.log_softmax(scores, axis=-1)
    probs = jax.nn.softmax(scores, axis=-1)
    min_real = jnp.finfo(jnp.float32).min
    ent = -jnp.sum(jnp.maximum(logp, min_real) * probs, axis=-1)
    return probs, logp, ent


def init_params(key, state_feature_size):
    # nn.Linear default init: U(-1/sqrt(fan_in), 1/sqrt(fan_in)), bias=False.
    bound = 1.0 / np.sqrt(state_feature_size)
    w = jax.random.uniform(key, (state_feature_size, state_feature_size),
                           jnp.float32, minval=-bound, maxval=bound)
    return {"act_query_w": w}  # shape (out_features, in_features)


if __name__ == "__main__":
    B, N, F = 2, 8, 32  # batch, num_nodes, state_feature_size

    key = jax.random.PRNGKey(0)
    k_w, k_x, k_sample = jax.random.split(key, 3)

    params = init_params(k_w, F)
    input_feat = jax.random.normal(k_x, (B, N, F), jnp.float32)
    node_candidates = [[0, 2, 5], [1, 3, 4, 6]]
    prev_act = jnp.array([1, 4], dtype=jnp.int32)

    # Kernel vs pure-JAX reference (loose tol covers the approx reciprocal).
    mask = build_mask(B, N, node_candidates)
    probs, logp, ent = actor_pallas(input_feat, params["act_query_w"], mask, prev_act)
    jax.block_until_ready((probs, logp, ent))
    r_probs, r_logp, r_ent = actor_reference(input_feat, params["act_query_w"],
                                             mask, prev_act)
    assert np.allclose(np.asarray(probs), np.asarray(r_probs), atol=2e-2), "probs mismatch"
    assert np.allclose(np.asarray(logp), np.asarray(r_logp), atol=2e-2), "logp mismatch"
    assert np.allclose(np.asarray(ent), np.asarray(r_ent), atol=2e-2), "entropy mismatch"

    # Sampling path (known_action=None)
    act, log_prob, entropy = actor_net_forward(
        params, input_feat, node_candidates, prev_act,
        known_action=None, sample_key=k_sample)
    jax.block_until_ready((act, log_prob, entropy))

    # Known-action path (deterministic)
    known = jnp.array([2, 3], dtype=jnp.int32)
    act2, log_prob2, entropy2 = actor_net_forward(
        params, input_feat, node_candidates, prev_act, known_action=known)
    jax.block_until_ready((act2, log_prob2, entropy2))

    print("KERNEL_OK")
</pallas_src>

<mosaic_0001>
module attributes {stable_mosaic.version = 11 : i64} {
  func.func @_actor_kernel(%arg0: i32, %arg1: memref<2x1xi32, #tpu.memory_space<vmem>>, %arg2: memref<2x8x32xf32, #tpu.memory_space<vmem>>, %arg3: memref<32x32xf32, #tpu.memory_space<vmem>>, %arg4: memref<2x8xf32, #tpu.memory_space<vmem>>, %arg5: memref<2x8xf32, #tpu.memory_space<vmem>>, %arg6: memref<2x8xf32, #tpu.memory_space<vmem>>, %arg7: memref<2x1xf32, #tpu.memory_space<vmem>>) attributes {dimension_semantics = [#tpu.dimension_semantics<parallel>], iteration_bounds = array<i64: 1>, scalar_prefetch = 0 : i64, scratch_operands = 0 : i64, tpu.core_type = #tpu.core_type<tc>, window_params = [{transform_indices = @transform_0, window_bounds = array<i64: 2, 1>}, {transform_indices = @transform_1, window_bounds = array<i64: 2, 8, 32>}, {pipeline_mode = #tpu.pipeline_mode<synchronous>, transform_indices = @transform_2, window_bounds = array<i64: 32, 32>}, {transform_indices = @transform_3, window_bounds = array<i64: 2, 8>}, {transform_indices = @transform_4, window_bounds = array<i64: 2, 8>}, {transform_indices = @transform_5, window_bounds = array<i64: 2, 8>}, {transform_indices = @transform_6, window_bounds = array<i64: 2, 1>}]} {
    %c0 = arith.constant 0 : index
    %c0_0 = arith.constant 0 : index
    %c0_1 = arith.constant 0 : index
    %0 = vector.load %arg2[%c0, %c0_0, %c0_1] : memref<2x8x32xf32, #tpu.memory_space<vmem>>, vector<2x8x32xf32>
    %1 = tpu.iota {dimensions = array<i32: 1>} : vector<2x8xi32>
    %c0_2 = arith.constant 0 : index
    %c0_3 = arith.constant 0 : index
    %2 = vector.load %arg1[%c0_2, %c0_3] : memref<2x1xi32, #tpu.memory_space<vmem>>, vector<2x1xi32>
    %3 = vector.broadcast %2 : vector<2x1xi32> to vector<2x8xi32>
    %4 = arith.cmpi eq, %1, %3 : vector<2x8xi32>
    %5 = arith.extui %4 : vector<2x8xi1> to vector<2x8xi32>
    %6 = arith.sitofp %5 : vector<2x8xi32> to vector<2x8xf32>
    %7 = vector.shape_cast %6 : vector<2x8xf32> to vector<2x8x1xf32>
    %8 = vector.broadcast %7 : vector<2x8x1xf32> to vector<2x8x32xf32>
    %9 = arith.mulf %8, %0 : vector<2x8x32xf32>
    %cst = arith.constant dense<0.000000e+00> : vector<2x32xf32>
    %10 = vector.multi_reduction <add>, %9, %cst [1] : vector<2x8x32xf32> to vector<2x32xf32>
    %c0_4 = arith.constant 0 : index
    %c0_5 = arith.constant 0 : index
    %11 = vector.load %arg3[%c0_4, %c0_5] : memref<32x32xf32, #tpu.memory_space<vmem>>, vector<32x32xf32>
    %cst_6 = arith.constant dense<0.000000e+00> : vector<2x32xf32>
    %12 = tpu.matmul %10, %11, %cst_6 {dimension_numbers = #tpu.dot_dimension_numbers<[1], [0], [0], [1], [0, 0, 1, 1], [], []>} : vector<2x32xf32>, vector<32x32xf32>, vector<2x32xf32> -> vector<2x32xf32>
    %13 = math.tanh %12 : vector<2x32xf32>
    %14 = vector.shape_cast %13 : vector<2x32xf32> to vector<2x1x32xf32>
    %15 = vector.broadcast %14 : vector<2x1x32xf32> to vector<2x8x32xf32>
    %16 = arith.mulf %15, %0 : vector<2x8x32xf32>
    %cst_7 = arith.constant dense<0.000000e+00> : vector<2x8xf32>
    %17 = vector.multi_reduction <add>, %16, %cst_7 [2] : vector<2x8x32xf32> to vector<2x8xf32>
    %c0_8 = arith.constant 0 : index
    %c0_9 = arith.constant 0 : index
    %18 = vector.load %arg4[%c0_8, %c0_9] : memref<2x8xf32, #tpu.memory_space<vmem>>, vector<2x8xf32>
    %19 = arith.addf %17, %18 : vector<2x8xf32>
    %cst_10 = arith.constant dense<0xFF800000> : vector<2xf32>
    %20 = vector.multi_reduction <maximumf>, %19, %cst_10 [1] : vector<2x8xf32> to vector<2xf32>
    %21 = vector.shape_cast %20 : vector<2xf32> to vector<2x1xf32>
    %22 = vector.broadcast %21 : vector<2x1xf32> to vector<2x8xf32>
    %23 = arith.subf %19, %22 : vector<2x8xf32>
    %24 = math.exp %23 : vector<2x8xf32>
    %cst_11 = arith.constant dense<0.000000e+00> : vector<2xf32>
    %25 = vector.multi_reduction <add>, %24, %cst_11 [1] : vector<2x8xf32> to vector<2xf32>
    %26 = vector.shape_cast %25 : vector<2xf32> to vector<2x1xf32>
    %27 = tpu.reciprocal %26 {approx = true} : vector<2x1xf32> -> vector<2x1xf32>
    %28 = vector.broadcast %27 : vector<2x1xf32> to vector<2x8xf32>
    %29 = arith.mulf %24, %28 : vector<2x8xf32>
    %30 = vector.broadcast %21 : vector<2x1xf32> to vector<2x8xf32>
    %31 = arith.subf %19, %30 : vector<2x8xf32>
    %32 = math.log %26 : vector<2x1xf32>
    %33 = vector.broadcast %32 : vector<2x1xf32> to vector<2x8xf32>
    %34 = arith.subf %31, %33 : vector<2x8xf32>
    %cst_12 = arith.constant -3.40282347E+38 : f32
    %35 = vector.broadcast %cst_12 : f32 to vector<2x8xf32>
    %36 = arith.maximumf %34, %35 : vector<2x8xf32>
    %37 = arith.mulf %36, %29 : vector<2x8xf32>
    %cst_13 = arith.constant dense<0.000000e+00> : vector<2xf32>
    %38 = vector.multi_reduction <add>, %37, %cst_13 [1] : vector<2x8xf32> to vector<2xf32>
    %39 = vector.shape_cast %38 : vector<2xf32> to vector<2x1xf32>
    %cst_14 = arith.constant 0.000000e+00 : f32
    %40 = vector.broadcast %cst_14 : f32 to vector<2x1xf32>
    %41 = arith.subf %40, %39 : vector<2x1xf32>
    %c0_15 = arith.constant 0 : index
    %c0_16 = arith.constant 0 : index
    %42 = vector.load %arg5[%c0_15, %c0_16] : memref<2x8xf32, #tpu.memory_space<vmem>>, vector<2x8xf32>
    tpu.vector_store %arg5[%c0_15, %c0_16], %29 {strides = array<i32>} : memref<2x8xf32, #tpu.memory_space<vmem>>, vector<2x8xf32>,
    %c0_17 = arith.constant 0 : index
    %c0_18 = arith.constant 0 : index
    %43 = vector.load %arg6[%c0_17, %c0_18] : memref<2x8xf32, #tpu.memory_space<vmem>>, vector<2x8xf32>
    tpu.vector_store %arg6[%c0_17, %c0_18], %34 {strides = array<i32>} : memref<2x8xf32, #tpu.memory_space<vmem>>, vector<2x8xf32>,
    %c0_19 = arith.constant 0 : index
    %c0_20 = arith.constant 0 : index
    %44 = vector.load %arg7[%c0_19, %c0_20] : memref<2x1xf32, #tpu.memory_space<vmem>>, vector<2x1xf32>
    tpu.vector_store %arg7[%c0_19, %c0_20], %41 {strides = array<i32>} : memref<2x1xf32, #tpu.memory_space<vmem>>, vector<2x1xf32>,
    return
  }
  func.func @transform_0(%arg0: i32) -> (i32, i32) {
    %c0_i32 = arith.constant 0 : i32
    %c0_i32_0 = arith.constant 0 : i32
    return %arg0, %c0_i32 : i32, i32
  }
  func.func @transform_1(%arg0: i32) -> (i32, i32, i32) {
    %c0_i32 = arith.constant 0 : i32
    %c0_i32_0 = arith.constant 0 : i32
    %c0_i32_1 = arith.constant 0 : i32
    return %arg0, %c0_i32, %c0_i32_0 : i32, i32, i32
  }
  func.func @transform_2(%arg0: i32) -> (i32, i32) {
    %c0_i32 = arith.constant 0 : i32
    %c0_i32_0 = arith.constant 0 : i32
    %c0_i32_1 = arith.constant 0 : i32
    return %c0_i32, %c0_i32_0 : i32, i32
  }
  func.func @transform_3(%arg0: i32) -> (i32, i32) {
    %c0_i32 = arith.constant 0 : i32
    %c0_i32_0 = arith.constant 0 : i32
    return %arg0, %c0_i32 : i32, i32
  }
  func.func @transform_4(%arg0: i32) -> (i32, i32) {
    %c0_i32 = arith.constant 0 : i32
    %c0_i32_0 = arith.constant 0 : i32
    return %arg0, %c0_i32 : i32, i32
  }
  func.func @transform_5(%arg0: i32) -> (i32, i32) {
    %c0_i32 = arith.constant 0 : i32
    %c0_i32_0 = arith.constant 0 : i32
    return %arg0, %c0_i32 : i32, i32
  }
  func.func @transform_6(%arg0: i32) -> (i32, i32) {
    %c0_i32 = arith.constant 0 : i32
    %c0_i32_0 = arith.constant 0 : i32
    return %arg0, %c0_i32 : i32, i32
  }
}

</mosaic_0001>

<bundles_post_ra>
// kernel: tpu_custom_call.1
= control target key start
LH: loop header
LB: loop body
LE: loop exit
PB: predicated region body
PF: predicated region fallthrough
CT: control target
= control target key end

     0   :  { %12 = vsyncpa [#allocation3], 0  ;;  %s723_s0 = inlined_call_operand.vmem [shape: s32[2,1], index: 0, kind: input, shape index: {}]   ;;  %s724_s1 = inlined_call_operand.hbm [shape: f32[2,8,32], index: 1, kind: input, shape index: {}]   ;;  %s725_s2 = inlined_call_operand.hbm [shape: f32[32,32], index: 2, kind: input, shape index: {}]   ;;  %s726_s3 = inlined_call_operand.vmem [shape: f32[2,8], index: 3, kind: input, shape index: {}]   ;;  %s727_s4 = inlined_call_operand.hbm [shape: f32[2,8], index: 4, kind: output, shape index: {0}]   ;;  %s728_s5 = inlined_call_operand.hbm [shape: f32[2,8], index: 5, kind: output, shape index: {1}]   ;;  %s729_s6 = inlined_call_operand.vmem [shape: f32[2,1], index: 6, kind: output, shape index: {2}]  }
   0x1   :  { %13 = vsyncpa [#allocation6], 0 }
   0x2   :  { %14 = vsyncpa [#allocation4], 0 }
   0x3   :  { %15 = vsyncpa [#allocation9], 0  ;;  %s566_s21 = smov [#allocation2]   ;;  %s470_s25 = scalar_lea.hbm %s724_s1, 256 }
   0x4   :  { %s23_s22 = sshll.u32 %s566_s21, 4  ;;  %p471_p0 = scmp.ne.s32.totalorder %s724_s1, %s470_s25  ;;  %s24_s22 = int_to_ptr.vmem [resolvable:$true] %s23_s22 }
   0x5   :  { %p474_p1 = scmp.lt.u32.totalorder %s470_s25, %s724_s1 }
   0x7   :  { %p476_p2 = pnand %p474_p1, %p471_p0 }
   0x9   :  { %479 = shalt.err (!%p476_p2)
}
   0xa   :  { %s480_s30 = scalar_lea.vmem %s24_s22, 256  ;;  %p485_p4 = scmp.lt.s32.totalorder %s24_s22, %s24_s22 }
   0xb   :  { %p481_p3 = scmp.ne.s32.totalorder %s24_s22, %s480_s30  ;;  %p486_p5 = scmp.lt.s32.totalorder %s480_s30, %s480_s30 }
   0xd   :  { %p487_p6 = por %p486_p5, %p485_p4 }
   0xf   :  { %p488_p7 = pnand %p487_p6, %p481_p3 }
  0x11   :  { %491 = shalt.err (!%p488_p7)
}
  0x12   :  { %s567_s7 = smov 128   ;;  %s568_s8 = smov 8  }
  0x13   :  { %29 = dma.hbm_to_vmem [thread:$0]  %s724_s1, 256, %s24_s22, [#allocation3], %s567_s7, %s567_s7, %s568_s8  }
  0x14   :  { %s569_s11 = smov [#allocation5]   ;;  %s492_s15 = scalar_lea.hbm %s725_s2, 512 }
  0x15   :  { %s35_s12 = sshll.u32 %s569_s11, 4  ;;  %p493_p8 = scmp.ne.s32.totalorder %s725_s2, %s492_s15  ;;  %s36_s12 = int_to_ptr.vmem [resolvable:$true] %s35_s12 }
  0x16   :  { %p496_p9 = scmp.lt.u32.totalorder %s492_s15, %s725_s2 }
  0x18   :  { %p498_p10 = pnand %p496_p9, %p493_p8 }
  0x1a   :  { %501 = shalt.err (!%p498_p10)
}
  0x1b   :  { %s502_s20 = scalar_lea.vmem %s36_s12, 512  ;;  %p507_p12 = scmp.lt.s32.totalorder %s36_s12, %s36_s12 }
  0x1c   :  { %p503_p11 = scmp.ne.s32.totalorder %s36_s12, %s502_s20  ;;  %p508_p13 = scmp.lt.s32.totalorder %s502_s20, %s502_s20 }
  0x1e   :  { %p509_p0 = por %p508_p13, %p507_p12 }
  0x20   :  { %p510_p1 = pnand %p509_p0, %p503_p11 }
  0x22   :  { %513 = shalt.err (!%p510_p1)
}
  0x23   :  { %41 = dma.hbm_to_vmem [thread:$0]  %s725_s2, 512, %s36_s12, [#allocation6], %s567_s7, %s567_s7, %s568_s8  }
  0x24   :  { %558 = dma.done.wait [#allocation3], 256  }
  0x25   :  { %559 = vsyncadd [#allocation3], 4294967040 }
  0x26   :  { %560 = dma.done.wait [#allocation6], 512  }
  0x27   :  { %561 = vsyncadd [#allocation6], 4294966784  ;;  %v570_v0 = vmov 0   ;;  %v54_v1 = vld [vmem:[%s723_s0] sm:$0x3]  ;;  %v52_v2 = vlaneseq  ;;  %v92_v6 = vld [vmem:[#allocation5] sm:$0xff] }
  0x28   :  { %458 = vset.pattern.permute.xlu0 %v570_v0  ;;  %459 = vset.pattern.permute.xlu1 %v570_v0  ;;  %v93_v7 = vld [vmem:[#allocation5 + $0x8] sm:$0xff]  ;;  %v571_v11 = vmov 0.0|0.0   ;;  %v572_v12 = vmov 0.0   ;;  %v94_v14 = vld [vmem:[#allocation5 + $0x10] sm:$0xff]  ;;  %v95_v15 = vld [vmem:[#allocation5 + $0x18] sm:$0xff]  ;;  %vm573_vm1 = vmmov 0  }
  0x29   :  { %56 = vperm.xlu0 %458, %v54_v1   ;;  %v639_v3 = vshrl.u32 %v52_v2, 7  ;;  %v641_v4 = vand.u32 127, %v52_v2  ;;  %v442_v9 = vpack.c.bf16 %v93_v7, %v92_v6  ;;  %441 = vmatprep.subr.bf16.mxu0 %v571_v11  ;;  %v445_v18 = vpack.c.bf16 %v95_v15, %v94_v14  ;;  %v51_v19 = vld [vmem:[#allocation2 + $0x8] sm:$0xff]  ;;  %v50_v20 = vld [vmem:[#allocation2] sm:$0xff]  ;;  %s576_s25 = smov [#allocation8]  }
  0x2a   :  { %438 = vmatprep.mubr.msk.f32.mxu0 %vm573_vm1, %v572_v12  ;;  %vm77_vm2 = vcmask 261120   ;;  %vm98_vm3 = vcmask 1041409   ;;  %v574_v41 = vmov 1966171168   ;;  %v214_v57 = vld [vmem:[%s726_s3] sm:$0x3] }
  0x2b   :  { %v644_v5 = vsub.s32 0, %v639_v3  ;;  %v647_v8 = vsub.s32 1, %v639_v3  ;;  %443 = vmatpush3.bf16.msra.mxu0 %v442_v9  ;;  %v175_v42 = vunpack.c.l.s4 %v574_v41  ;;  %v668_v2 = vsub.s32 %v641_v4, %v639_v3  ;;  %s575_s3 = smov [#allocation7]   ;;  %s405_s26 = sshll.u32 %s576_s25, 4  ;;  %s406_s26 = int_to_ptr.vmem [resolvable:$true] %s405_s26 }
  0x2c   :  { %444 = vmatprep.subr.bf16.mxu0 %v571_v11  ;;  %vm252_vm4 = vcmask 58368   ;;  %s395_s24 = sshll.u32 %s575_s3, 4  ;;  %s396_s24 = int_to_ptr.vmem [resolvable:$true] %s395_s24 }
  0x2d   :  { %v176_v44 = vunpack.c.0.s8 %v175_v42  ;;  %v226_v58 = vrot.slane %v214_v57, %v647_v8  ;;  %v219_v59 = vrot.slane %v214_v57, %v644_v5  ;;  %s514_s27 = scalar_lea.vmem %s396_s24, 32  ;;  %p519_p3 = scmp.lt.s32.totalorder %s396_s24, %s396_s24 }
  0x2e   :  { %p515_p2 = scmp.ne.s32.totalorder %s396_s24, %s514_s27  ;;  %p520_p4 = scmp.lt.s32.totalorder %s514_s27, %s514_s27 }
  0x2f   :  { %446 = vmatpush3.bf16.msra.mxu0 %v445_v18  ;;  %v179_v45 = vsub.s32 %v176_v44, %v639_v3 }
  0x30   :  { %p521_p5 = por %p520_p4, %p519_p3 }
  0x32   :  { %p522_p6 = pnand %p521_p5, %p515_p2 }
  0xa8   :  { %v57_v10 = vpop.permute.xlu0 %56 }
  0xa9   :  { %vm58_vm0 = vcmp.eq.s32.totalorder %v641_v4, %v57_v10 }
  0xaa   :  { %v423_v13 = vsel %vm58_vm0, 1.0, %v572_v12 }
  0xab   :  { %v71_v16 = vrot.slane %v423_v13, %v647_v8  ;;  %v64_v17 = vrot.slane %v423_v13, %v644_v5 }
  0xad   :  { %73 = vbcast.lane.b32.xlu1 %v71_v16, 256  ;;  %66 = vbcast.lane.b32.xlu0 %v64_v17, 256 }
 0x11f   :  { %v74_v21 = vpop.permute.xlu1 %73  ;;  %v67_v22 = vpop.permute.xlu0 %66 }
 0x120   :  { %v76_v23 = vmul.f32 %v74_v21, %v51_v19  ;;  %v75_v24 = vmul.f32 %v67_v22, %v50_v20 }
 0x122   :  { %v85_v25 = vsel %vm77_vm2, %v76_v23, 0.0  ;;  %v78_v26 = vsel %vm77_vm2, %v75_v24, 0.0 }
 0x123   :  { %v86_v27 = vrot.slane %v85_v25, 4  ;;  %v79_v28 = vrot.slane %v78_v26, 4 }
 0x125   :  { %v87_v29 = vadd.f32 %v86_v27, %v85_v25  ;;  %v80_v30 = vadd.f32 %v79_v28, %v78_v26 }
 0x127   :  { %v88_v31 = vrot.slane %v87_v29, 2  ;;  %v81_v32 = vrot.slane %v80_v30, 2 }
 0x129   :  { %v89_v33 = vadd.f32 %v88_v31, %v87_v29  ;;  %v82_v34 = vadd.f32 %v81_v32, %v80_v30 }
 0x12b   :  { %v90_v35 = vrot.slane %v89_v33, 1  ;;  %v83_v36 = vrot.slane %v82_v34, 1 }
 0x12d   :  { %v91_v37 = vadd.f32 %v90_v35, %v89_v33  ;;  %v84_v38 = vadd.f32 %v83_v36, %v82_v34 }
 0x12f   :  { %v99_v39 = vsel %vm98_vm3, %v91_v37, %v84_v38 }
 0x130   :  { %439 = vmatmul.mubr.msk.f32.vlgmr.msra.gmra.mrb[0].mxu0 %vm77_vm2, %v99_v39 }
 0x203   :  { %v168_v40 = vpop.f32.mrb[0].mxu0 }
 0x204   :  { %460 = vtanh.f32 %v168_v40  ;;  %v440_v43 = vpop.f32.mrb[1].mxu0 }
 0x20e   :  { %v461_v46 = vpop.eup %460 }
 0x20f   :  { %v180_v47 = vrot.slane %v461_v46, %v179_v45 }
 0x211   :  { %v188_v48 = vrot.slane %v180_v47, %v179_v45  ;;  %v181_v49 = vcombine.high %v180_v47, %v180_v47 }
 0x213   :  { %v199_v50 = vrot.slane %v188_v48, %v644_v5  ;;  %v195_v51 = vrot.slane %v181_v49, %v179_v45 }
 0x215   :  { %v206_v52 = vmul.f32 %v199_v50, %v50_v20  ;;  %v203_v53 = vrot.slane %v195_v51, %v644_v5 }
 0x217   :  { %v208_v54 = vsel %vm77_vm2, %v206_v52, 0.0  ;;  %v207_v55 = vmul.f32 %v203_v53, %v51_v19 }
 0x218   :  { %209 = vadd.xlane.f32.xlu1 %v208_v54 }
 0x219   :  { %v211_v56 = vsel %vm77_vm2, %v207_v55, 0.0 }
 0x21a   :  { %212 = vadd.xlane.f32.xlu0 %v211_v56 }
 0x229   :  { %228 = vbcast.lane.b32.xlu1 %v226_v58, 256 }
 0x230   :  { %221 = vbcast.lane.b32.xlu0 %v219_v59, 256 }
 0x2a5   :  { %v210_v60 = vpop.xlane.xlu1 %209 }
 0x2a7   :  { %v213_v61 = vpop.xlane.xlu0 %212 }
 0x2a9   :  { %v229_v62 = vpop.permute.xlu1 %228 }
 0x2aa   :  { %v233_v63 = vadd.f32 %v229_v62, %v213_v61 }
 0x2ab   :  { %v222_v0 = vpop.permute.xlu0 %221 }
 0x2ac   :  { %v232_v1 = vadd.f32 %v222_v0, %v210_v60  ;;  %240 = vperm.xlu0 %458, %v233_v63  }
 0x2ae   :  { %237 = vperm.xlu1 %459, %v232_v1  }
 0x32b   :  { %v241_v6 = vpop.permute.xlu0 %240 }
 0x32c   :  { %v249_v9 = vrot.slane %v241_v6, %v668_v2 }
 0x32d   :  { %v238_v7 = vpop.permute.xlu1 %237 }
 0x32e   :  { %v245_v10 = vrot.slane %v238_v7, %v668_v2 }
 0x330   :  { %v250_v11 = vsel %vm98_vm3, %v249_v9, %v245_v10 }
 0x331   :  { %v253_v12 = vsel %vm252_vm4, %v250_v11, -inf }
 0x332   :  { %254 = vmax.xlane.f32.xlu1 %v253_v12 }
 0x3bf   :  { %v255_v13 = vpop.xlane.xlu1 %254 }
 0x3c0   :  { %v260_v14 = vrot.slane %v255_v13, %v644_v5  ;;  %v264_v15 = vrot.slane %v255_v13, %v647_v8 }
 0x3c2   :  { %v267_v16 = vsub.f32 %v232_v1, %v260_v14  ;;  %v268_v3 = vsub.f32 %v233_v63, %v264_v15 }
 0x3c4   :  { %v269_v4 = vmul.f32 1.442695, %v267_v16  ;;  %v271_v17 = vmul.f32 1.442695, %v268_v3 }
 0x3c6   :  { %462 = vpow2.f32 %v269_v4 }
 0x3c7   :  { %464 = vpow2.f32 %v271_v17 }
 0x3d0   :  { %v463_v18 = vpop.eup %462 }
 0x3d1   :  { %276 = vperm.xlu0 %458, %v463_v18   ;;  %v465_v19 = vpop.eup %464 }
 0x3d5   :  { %279 = vperm.xlu0 %458, %v465_v19  }
 0x450   :  { %v277_v20 = vpop.permute.xlu0 %276 }
 0x451   :  { %v284_v22 = vrot.slane %v277_v20, %v668_v2 }
 0x454   :  { %v280_v21 = vpop.permute.xlu0 %279 }
 0x455   :  { %v288_v23 = vrot.slane %v280_v21, %v668_v2 }
 0x457   :  { %v289_v24 = vsel %vm98_vm3, %v288_v23, %v284_v22 }
 0x458   :  { %v291_v25 = vsel %vm252_vm4, %v289_v24, 0.0 }
 0x459   :  { %292 = vadd.xlane.f32.xlu0 %v291_v25 }
 0x4e6   :  { %v293_v26 = vpop.xlane.xlu0 %292 }
 0x4e7   :  { %466 = vrcp.f32 %v293_v26 }
 0x4e8   :  { %468 = vlog2.f32 %v293_v26 }
 0x4f1   :  { %v467_v27 = vpop.eup %466 }
 0x4f2   :  { %v469_v28 = vpop.eup %468  ;;  %v303_v32 = vrot.slane %v467_v27, %v647_v8  ;;  %v299_v33 = vrot.slane %v467_v27, %v644_v5 }
 0x4f3   :  { %v309_v29 = vmul.f32 0.6931472, %v469_v28 }
 0x4f4   :  { %v307_v36 = vmul.f32 %v465_v19, %v303_v32  ;;  %v306_v38 = vmul.f32 %v463_v18, %v299_v33 }
 0x4f5   :  { %v314_v30 = vrot.slane %v309_v29, %v644_v5  ;;  %v318_v31 = vrot.slane %v309_v29, %v647_v8 }
 0x4f7   :  { %v322_v34 = vsub.f32 %v268_v3, %v318_v31  ;;  %v321_v35 = vsub.f32 %v267_v16, %v314_v30 }
 0x4f9   :  { %v324_v37 = vmax.f32 %v322_v34, -3.4028235e+38  ;;  %v323_v39 = vmax.f32 %v321_v35, -3.4028235e+38 }
 0x4fb   :  { %v326_v40 = vmul.f32 %v324_v37, %v307_v36  ;;  %v325_v41 = vmul.f32 %v323_v39, %v306_v38 }
 0x4fd   :  { %333 = vperm.xlu0 %458, %v326_v40   ;;  %330 = vperm.xlu1 %459, %v325_v41  }
 0x501   :  { %352 = vperm.xlu0 %458, %v306_v38  }
 0x505   :  { %355 = vperm.xlu0 %458, %v307_v36  }
 0x509   :  { %371 = vperm.xlu0 %458, %v321_v35  }
 0x50d   :  { %374 = vperm.xlu0 %458, %v322_v34  }
 0x57c   :  { %v334_v42 = vpop.permute.xlu0 %333  ;;  %v331_v43 = vpop.permute.xlu1 %330 }
 0x57d   :  { %v342_v8 = vrot.slane %v334_v42, %v668_v2  ;;  %v338_v5 = vrot.slane %v331_v43, %v668_v2 }
 0x57f   :  { %v343_v44 = vsel %vm98_vm3, %v342_v8, %v338_v5 }
 0x580   :  { %v353_v45 = vpop.permute.xlu0 %352  ;;  %v345_v46 = vsel %vm252_vm4, %v343_v44, 0.0 }
 0x581   :  { %346 = vadd.xlane.f32.xlu1 %v345_v46  ;;  %v360_v48 = vrot.slane %v353_v45, %v668_v2 }
 0x584   :  { %v356_v47 = vpop.permute.xlu0 %355 }
 0x585   :  { %v364_v49 = vrot.slane %v356_v47, %v668_v2 }
 0x587   :  { %v365_v50 = vsel %vm98_vm3, %v364_v49, %v360_v48 }
 0x588   :  { %v372_v51 = vpop.permute.xlu0 %371  ;;  %367 = vst.msk [vmem:[#allocation7] sm:$0x3] %vm252_vm4, %v365_v50 }
 0x589   :  { %v379_v53 = vrot.slane %v372_v51, %v668_v2 }
 0x58c   :  { %v375_v52 = vpop.permute.xlu0 %374 }
 0x58d   :  { %v383_v54 = vrot.slane %v375_v52, %v668_v2 }
 0x58f   :  { %v384_v55 = vsel %vm98_vm3, %v383_v54, %v379_v53 }
 0x590   :  { %386 = vst.msk [vmem:[#allocation8] sm:$0x3] %vm252_vm4, %v384_v55 }
 0x591   :  { %525 = shalt.err (!%p522_p6)
}
 0x592   :  { %s526_s30 = scalar_lea.hbm %s727_s4, 32 }
 0x593   :  { %p527_p7 = scmp.ne.s32.totalorder %s727_s4, %s526_s30  ;;  %p530_p8 = scmp.lt.u32.totalorder %s526_s30, %s727_s4 }
 0x595   :  { %p532_p9 = pnand %p530_p8, %p527_p7 }
 0x597   :  { %535 = shalt.err (!%p532_p9)
}
 0x598   :  { %398 = dma.vmem_to_hbm [thread:$0]  %s396_s24, 32, %s727_s4, [#allocation4]  }
 0x599   :  { %s536_s13 = scalar_lea.vmem %s406_s26, 32  ;;  %p541_p11 = scmp.lt.s32.totalorder %s406_s26, %s406_s26 }
 0x59a   :  { %p537_p10 = scmp.ne.s32.totalorder %s406_s26, %s536_s13  ;;  %p542_p12 = scmp.lt.s32.totalorder %s536_s13, %s536_s13 }
 0x59c   :  { %p543_p13 = por %p542_p12, %p541_p11 }
 0x59e   :  { %p544_p0 = pnand %p543_p13, %p537_p10 }
 0x5a0   :  { %547 = shalt.err (!%p544_p0)
}
 0x5a1   :  { %s548_s16 = scalar_lea.hbm %s728_s5, 32 }
 0x5a2   :  { %p549_p1 = scmp.ne.s32.totalorder %s728_s5, %s548_s16  ;;  %p552_p2 = scmp.lt.u32.totalorder %s548_s16, %s728_s5 }
 0x5a4   :  { %p554_p3 = pnand %p552_p2, %p549_p1 }
 0x5a6   :  { %557 = shalt.err (!%p554_p3)
}
 0x5a7   :  { %408 = dma.vmem_to_hbm [thread:$0]  %s406_s26, 32, %s728_s5, [#allocation9]   ;;  %vm387_vm5 = vcmask 1024  }
 0x60e   :  { %v347_v56 = vpop.xlane.xlu1 %346 }
 0x60f   :  { %v348_v57 = vsub.f32 0.0, %v347_v56 }
 0x611   :  { %388 = vst.msk [vmem:[%s729_s6] sm:$0x3] %vm387_vm5, %v348_v57 }
 0x612   :  { %562 = dma.done.wait [#allocation4], 32  }
 0x613   :  { %563 = vsyncadd [#allocation4], 4294967264 }
 0x614   :  { %564 = dma.done.wait [#allocation9], 32  }
 0x615   :  { %565 = vsyncadd [#allocation9], 4294967264 }
 0x616   :  { %419 = vsyncpa [#allocation3], 1 }
 0x617   :  { %420 = vsyncpa [#allocation6], 1 }
 0x618   :  { %421 = vsyncpa [#allocation4], 1 }
 0x619   :  { %422 = vsyncpa [#allocation9], 1 }

</bundles_post_ra>
